<compile_context>
chip_gen: v5e
topology: v5e:2x2
jax: 0.10.0
libtpu: 0.0.40
codegen_flags: <defaults>
</compile_context>

<pallas_src>
import functools

import jax
import jax.numpy as jnp
from jax.experimental import pallas as pl
from jax.experimental.pallas import tpu as pltpu


_LANE = 128
_VMEM_LIMIT_BYTES = 32 * 1024 * 1024   # raise v5e's 16 MiB default; == v6e/v7x default
_SMALL_N_PAD = 1024                     # threshold for the fully fused single-call path


def _round_up(n, m):
    return ((n + m - 1) // m) * m


def _choose_tiles(m, k):
    """Big row/contraction tiles to amortize per-step overhead and cut B
    re-streaming; keep >= 2 row blocks when possible (v7x megacore)."""
    tm = _LANE
    for t in (2048, 1024, 512, 256, 128):
        if m % t == 0 and (m // t >= 2 or t == m):
            tm = t
            break
    tk = _LANE
    for t in (1024, 512, 256, 128):
        if k % t == 0:
            tk = t
            break
    return tm, tk


# --------------------------------------------------------------------------
# Tiled kernel 1: single-head GCN layer  o = act((A @ B) @ W + bias)
# Grid = (row blocks of A, contraction blocks).  W/bias resident in VMEM.
# --------------------------------------------------------------------------
def _gcn_conv_kernel(a_ref, b_ref, w_ref, bias_ref, o_ref, acc_ref, *, relu):
    k = pl.program_id(1)

    @pl.when(k == 0)
    def _():
        acc_ref[...] = jnp.zeros_like(acc_ref)

    # bf16 operands feed the MXU; accumulate in f32.
    acc_ref[...] += jnp.dot(a_ref[...], b_ref[...],
                            preferred_element_type=jnp.float32)

    @pl.when(k == pl.num_programs(1) - 1)
    def _():
        agg = acc_ref[...].astype(jnp.bfloat16)
        h = jnp.dot(agg, w_ref[...], preferred_element_type=jnp.float32)
        h = h + bias_ref[...]
        if relu:
            h = jnp.maximum(h, 0.0)
        o_ref[...] = h.astype(o_ref.dtype)


def gcn_conv_fused(a_hat, b, w, bias, *, relu, out_dtype):
    m, k_dim = a_hat.shape
    k2, f_in = b.shape
    f_in2, f_out = w.shape
    assert k_dim == k2 and f_in == f_in2 and bias.shape == (1, f_out)

    tm, tk = _choose_tiles(m, k_dim)
    grid = (m // tm, k_dim // tk)

    cost = pl.CostEstimate(
        flops=2 * m * k_dim * f_in + 2 * m * f_in * f_out,
        transcendentals=0,
        bytes_accessed=int(m * k_dim * 2 + (m // tm) * k_dim * f_in * 2
                           + f_in * f_out * 2
                           + m * f_out * jnp.dtype(out_dtype).itemsize),
    )

    return pl.pallas_call(
        functools.partial(_gcn_conv_kernel, relu=relu),
        out_shape=jax.ShapeDtypeStruct((m, f_out), out_dtype),
        grid_spec=pltpu.PrefetchScalarGridSpec(
            num_scalar_prefetch=0,
            grid=grid,
            in_specs=[
                pl.BlockSpec((tm, tk), lambda i, k: (i, k)),        # A_hat
                pl.BlockSpec((tk, f_in), lambda i, k: (k, 0)),      # X / H
                pl.BlockSpec((f_in, f_out), lambda i, k: (0, 0)),   # W (resident)
                pl.BlockSpec((1, f_out), lambda i, k: (0, 0)),      # bias (resident)
            ],
            out_specs=pl.BlockSpec((tm, f_out), lambda i, k: (i, 0)),
            scratch_shapes=[pltpu.VMEM((tm, f_in), jnp.float32)],
        ),
        compiler_params=pltpu.CompilerParams(
            dimension_semantics=("parallel", "arbitrary"),
            vmem_limit_bytes=_VMEM_LIMIT_BYTES,
        ),
        cost_estimate=cost,
    )(a_hat, b, w, bias)


# --------------------------------------------------------------------------
# Tiled kernel 2: dual-head layer.  mu/logstd share one A_hat @ H contraction;
# both head matmuls run in the epilogue.
# --------------------------------------------------------------------------
def _gcn_dual_head_kernel(a_ref, h_ref, wmu_ref, wls_ref, bmu_ref, bls_ref,
                          mu_ref, ls_ref, acc_ref):
    k = pl.program_id(1)

    @pl.when(k == 0)
    def _():
        acc_ref[...] = jnp.zeros_like(acc_ref)

    acc_ref[...] += jnp.dot(a_ref[...], h_ref[...],
                            preferred_element_type=jnp.float32)

    @pl.when(k == pl.num_programs(1) - 1)
    def _():
        agg = acc_ref[...].astype(jnp.bfloat16)
        mu = jnp.dot(agg, wmu_ref[...], preferred_element_type=jnp.float32)
        ls = jnp.dot(agg, wls_ref[...], preferred_element_type=jnp.float32)
        mu_ref[...] = (mu + bmu_ref[...]).astype(mu_ref.dtype)
        ls_ref[...] = (ls + bls_ref[...]).astype(ls_ref.dtype)


def gcn_dual_head_fused(a_hat, h, w_mu, b_mu, w_ls, b_ls, *, out_dtype):
    m, k_dim = a_hat.shape
    k2, f_in = h.shape
    f_in2, f_out = w_mu.shape
    assert k_dim == k2 and f_in == f_in2
    assert w_ls.shape == (f_in, f_out)
    assert b_mu.shape == (1, f_out) and b_ls.shape == (1, f_out)

    tm, tk = _choose_tiles(m, k_dim)
    grid = (m // tm, k_dim // tk)

    out_bytes = 2 * m * f_out * jnp.dtype(out_dtype).itemsize
    cost = pl.CostEstimate(
        flops=2 * m * k_dim * f_in + 4 * m * f_in * f_out,
        transcendentals=0,
        bytes_accessed=int(m * k_dim * 2 + (m // tm) * k_dim * f_in * 2
                           + 2 * f_in * f_out * 2 + out_bytes),
    )

    return pl.pallas_call(
        _gcn_dual_head_kernel,
        out_shape=(jax.ShapeDtypeStruct((m, f_out), out_dtype),
                   jax.ShapeDtypeStruct((m, f_out), out_dtype)),
        grid_spec=pltpu.PrefetchScalarGridSpec(
            num_scalar_prefetch=0,
            grid=grid,
            in_specs=[
                pl.BlockSpec((tm, tk), lambda i, k: (i, k)),        # A_hat
                pl.BlockSpec((tk, f_in), lambda i, k: (k, 0)),      # H
                pl.BlockSpec((f_in, f_out), lambda i, k: (0, 0)),   # W_mu
                pl.BlockSpec((f_in, f_out), lambda i, k: (0, 0)),   # W_logstd
                pl.BlockSpec((1, f_out), lambda i, k: (0, 0)),      # b_mu
                pl.BlockSpec((1, f_out), lambda i, k: (0, 0)),      # b_logstd
            ],
            out_specs=[pl.BlockSpec((tm, f_out), lambda i, k: (i, 0)),
                       pl.BlockSpec((tm, f_out), lambda i, k: (i, 0))],
            scratch_shapes=[pltpu.VMEM((tm, f_in), jnp.float32)],
        ),
        compiler_params=pltpu.CompilerParams(
            dimension_semantics=("parallel", "arbitrary"),
            vmem_limit_bytes=_VMEM_LIMIT_BYTES,
        ),
        cost_estimate=cost,
    )(a_hat, h, w_mu, w_ls, b_mu, b_ls)


# --------------------------------------------------------------------------
# Small-N fast path: the whole encoder in one pallas_call, everything in VMEM.
# --------------------------------------------------------------------------
def _encoder_small_kernel(a_ref, x_ref, w1_ref, b1_ref,
                          wmu_ref, bmu_ref, wls_ref, bls_ref,
                          mu_ref, ls_ref):
    a = a_ref[...]
    ax = jnp.dot(a, x_ref[...], preferred_element_type=jnp.float32)
    h = jnp.dot(ax.astype(jnp.bfloat16), w1_ref[...],
                preferred_element_type=jnp.float32)
    h = jnp.maximum(h + b1_ref[...], 0.0).astype(jnp.bfloat16)
    ah = jnp.dot(a, h, preferred_element_type=jnp.float32).astype(jnp.bfloat16)
    mu = jnp.dot(ah, wmu_ref[...], preferred_element_type=jnp.float32)
    ls = jnp.dot(ah, wls_ref[...], preferred_element_type=jnp.float32)
    mu_ref[...] = (mu + bmu_ref[...]).astype(mu_ref.dtype)
    ls_ref[...] = (ls + bls_ref[...]).astype(ls_ref.dtype)


def encoder_small(a_hat, x_p, w1, b1, w_mu, b_mu, w_ls, b_ls, *, out_dtype):
    n_pad = a_hat.shape[0]
    f_out = w_mu.shape[1]
    return pl.pallas_call(
        _encoder_small_kernel,
        out_shape=(jax.ShapeDtypeStruct((n_pad, f_out), out_dtype),
                   jax.ShapeDtypeStruct((n_pad, f_out), out_dtype)),
        compiler_params=pltpu.CompilerParams(
            vmem_limit_bytes=_VMEM_LIMIT_BYTES,
        ),
    )(a_hat, x_p, w1, b1, w_mu, b_mu, w_ls, b_ls)


# --------------------------------------------------------------------------
# Normalized adjacency (plain-JAX glue, fused under jit)
# --------------------------------------------------------------------------
def _normalized_adjacency_bf16(edge_index, num_nodes, num_nodes_padded):
    """A_hat = D^{-1/2}(A + I)D^{-1/2}; dense, undirected, de-duplicated
    self-loops (diagonal exactly 1); padded rows/cols zero.  Produced directly
    as bf16 in one fused expression (no standalone N^2 cast pass)."""
    src, dst = edge_index[0], edge_index[1]
    a = jnp.zeros((num_nodes_padded, num_nodes_padded), jnp.float32)
    a = a.at[src, dst].set(1.0)
    a = a.at[dst, src].set(1.0)                      # undirected
    idx = jnp.arange(num_nodes)
    a = a.at[idx, idx].set(1.0)                      # one self-loop per real node
    deg = jnp.sum(a, axis=1)
    dinv = jnp.where(deg > 0.0, jax.lax.rsqrt(jnp.maximum(deg, 1e-12)), 0.0)
    return (a * dinv[:, None] * dinv[None, :]).astype(jnp.bfloat16)


# --------------------------------------------------------------------------
# Jitted forward
# --------------------------------------------------------------------------
def _make_forward(in_channels, out_channels, *, small_n_pad=_SMALL_N_PAD):
    in_p = _round_up(in_channels, _LANE)

    def fwd(params, x, edge_index):
        n = x.shape[0]
        n_pad = _round_up(n, _LANE)

        a_hat = _normalized_adjacency_bf16(edge_index, n, n_pad)
        x_p = jnp.pad(
            x, ((0, n_pad - n), (0, in_p - in_channels))).astype(jnp.bfloat16)

        if n_pad <= small_n_pad:
            # single launch, no HBM intermediates.
            mu_p, ls_p = encoder_small(
                a_hat, x_p, params["w1"], params["b1"],
                params["w_mu"], params["b_mu"], params["w_ls"], params["b_ls"],
                out_dtype=jnp.float32)
        else:
            # two launches; weight matmuls fused into the A_hat contraction
            # epilogues, heads share one A_hat @ H.
            h = gcn_conv_fused(a_hat, x_p, params["w1"], params["b1"],
                               relu=True, out_dtype=jnp.bfloat16)
            mu_p, ls_p = gcn_dual_head_fused(
                a_hat, h, params["w_mu"], params["b_mu"],
                params["w_ls"], params["b_ls"], out_dtype=jnp.float32)

        return mu_p[:n, :out_channels], ls_p[:n, :out_channels]

    return jax.jit(fwd)


# --------------------------------------------------------------------------
# VariationalGCNEncoder
# --------------------------------------------------------------------------
class VariationalGCNEncoderPallas:
    """forward(x, edge_index) -> (mu, logstd), matching
       h = relu(conv1(x)); return (conv_mu(h), conv_logstd(h))."""

    def __init__(self, in_channels, out_channels, key):
        hidden = 2 * out_channels
        self.in_channels = in_channels
        self.out_channels = out_channels
        self.hidden = hidden
        self.in_p = _round_up(in_channels, _LANE)
        self.hid_p = _round_up(hidden, _LANE)
        self.out_p = _round_up(out_channels, _LANE)

        k1, k2, k3 = jax.random.split(key, 3)

        def glorot(k, fi, fo):
            s = (6.0 / (fi + fo)) ** 0.5
            return jax.random.uniform(k, (fi, fo), jnp.float32, -s, s)

        def pad_w(w, fi_p, fo_p):
            fi, fo = w.shape
            return jnp.pad(w, ((0, fi_p - fi), (0, fo_p - fo))).astype(jnp.bfloat16)

        self.params = {
            "w1":   pad_w(glorot(k1, in_channels, hidden), self.in_p, self.hid_p),
            "b1":   jnp.zeros((1, self.hid_p), jnp.float32),
            "w_mu": pad_w(glorot(k2, hidden, out_channels), self.hid_p, self.out_p),
            "b_mu": jnp.zeros((1, self.out_p), jnp.float32),
            "w_ls": pad_w(glorot(k3, hidden, out_channels), self.hid_p, self.out_p),
            "b_ls": jnp.zeros((1, self.out_p), jnp.float32),
        }

        self._fwd = _make_forward(in_channels, out_channels)
        self._fwd_tiled = _make_forward(in_channels, out_channels, small_n_pad=0)

    def forward(self, x, edge_index):
        return self._fwd(self.params, x, edge_index)

    def forward_tiled(self, x, edge_index):
        """Force the tiled (large-N) two-call path — used for validation."""
        return self._fwd_tiled(self.params, x, edge_index)


# --------------------------------------------------------------------------
# Pure-JAX f32 reference (uses the bf16-quantized weights)
# --------------------------------------------------------------------------
def _reference_forward(model, x, edge_index):
    n = x.shape[0]
    src, dst = edge_index[0], edge_index[1]
    a = jnp.zeros((n, n), jnp.float32)
    a = a.at[src, dst].set(1.0).at[dst, src].set(1.0)
    idx = jnp.arange(n)
    a = a.at[idx, idx].set(1.0)
    deg = jnp.sum(a, axis=1)
    dinv = jnp.where(deg > 0.0, deg ** -0.5, 0.0)
    a_hat = a * dinv[:, None] * dinv[None, :]
    w1 = model.params["w1"][:model.in_channels, :model.hidden].astype(jnp.float32)
    wmu = model.params["w_mu"][:model.hidden, :model.out_channels].astype(jnp.float32)
    wls = model.params["w_ls"][:model.hidden, :model.out_channels].astype(jnp.float32)
    h = jnp.maximum(a_hat @ (x @ w1), 0.0)
    return a_hat @ (h @ wmu), a_hat @ (h @ wls)


# --------------------------------------------------------------------------
# Main
# --------------------------------------------------------------------------
if __name__ == "__main__":
    key = jax.random.PRNGKey(0)
    k_x, k_e, k_p = jax.random.split(key, 3)

    num_nodes = 16
    in_channels = 8      # cfg.data.num_features
    out_channels = 16    # cfg.model.out_channels (hidden = 2 * out_channels)
    num_edges = 32

    x = jax.random.normal(k_x, (num_nodes, in_channels), jnp.float32)
    edge_index = jax.random.randint(k_e, (2, num_edges), 0, num_nodes, jnp.int32)

    model = VariationalGCNEncoderPallas(in_channels, out_channels, k_p)

    # fast (fully fused, single pallas_call) path
    mu, logstd = jax.block_until_ready(model.forward(x, edge_index))
    assert mu.shape == (num_nodes, out_channels)
    assert logstd.shape == (num_nodes, out_channels)
    assert bool(jnp.all(jnp.isfinite(mu)))
    assert bool(jnp.all(jnp.isfinite(logstd)))

    # tiled (large-N, epilogue-fused) path must agree with the fast path
    mu_t, ls_t = jax.block_until_ready(model.forward_tiled(x, edge_index))
    assert bool(jnp.allclose(mu, mu_t, rtol=1e-2, atol=1e-2))
    assert bool(jnp.allclose(logstd, ls_t, rtol=1e-2, atol=1e-2))

    # f32 pure-JAX reference (bf16 MXU path -> loose tolerance)
    mu_r, ls_r = _reference_forward(model, x, edge_index)
    assert bool(jnp.allclose(mu, mu_r, rtol=5e-2, atol=5e-2))
    assert bool(jnp.allclose(logstd, ls_r, rtol=5e-2, atol=5e-2))

    print("KERNEL_OK")
</pallas_src>

<mosaic_0001>
module attributes {stable_mosaic.version = 11 : i64} {
  func.func @_encoder_small_kernel(%arg0: memref<128x128xbf16, #tpu.memory_space<vmem>>, %arg1: memref<128x128xbf16, #tpu.memory_space<vmem>>, %arg2: memref<128x128xbf16, #tpu.memory_space<vmem>>, %arg3: memref<1x128xf32, #tpu.memory_space<vmem>>, %arg4: memref<128x128xbf16, #tpu.memory_space<vmem>>, %arg5: memref<1x128xf32, #tpu.memory_space<vmem>>, %arg6: memref<128x128xbf16, #tpu.memory_space<vmem>>, %arg7: memref<1x128xf32, #tpu.memory_space<vmem>>, %arg8: memref<128x128xf32, #tpu.memory_space<vmem>>, %arg9: memref<128x128xf32, #tpu.memory_space<vmem>>) attributes {dimension_semantics = [], scalar_prefetch = 0 : i64, scratch_operands = 0 : i64, tpu.core_type = #tpu.core_type<tc>} {
    %c0 = arith.constant 0 : index
    %c0_0 = arith.constant 0 : index
    %0 = vector.load %arg0[%c0, %c0_0] : memref<128x128xbf16, #tpu.memory_space<vmem>>, vector<128x128xbf16>
    %c0_1 = arith.constant 0 : index
    %c0_2 = arith.constant 0 : index
    %1 = vector.load %arg1[%c0_1, %c0_2] : memref<128x128xbf16, #tpu.memory_space<vmem>>, vector<128x128xbf16>
    %cst = arith.constant dense<0.000000e+00> : vector<128x128xf32>
    %2 = tpu.matmul %0, %1, %cst {dimension_numbers = #tpu.dot_dimension_numbers<[1], [0], [0], [1], [0, 0, 1, 1], [], []>} : vector<128x128xbf16>, vector<128x128xbf16>, vector<128x128xf32> -> vector<128x128xf32>
    %3 = arith.truncf %2 : vector<128x128xf32> to vector<128x128xbf16>
    %c0_3 = arith.constant 0 : index
    %c0_4 = arith.constant 0 : index
    %4 = vector.load %arg2[%c0_3, %c0_4] : memref<128x128xbf16, #tpu.memory_space<vmem>>, vector<128x128xbf16>
    %cst_5 = arith.constant dense<0.000000e+00> : vector<128x128xf32>
    %5 = tpu.matmul %3, %4, %cst_5 {dimension_numbers = #tpu.dot_dimension_numbers<[1], [0], [0], [1], [0, 0, 1, 1], [], []>} : vector<128x128xbf16>, vector<128x128xbf16>, vector<128x128xf32> -> vector<128x128xf32>
    %c0_6 = arith.constant 0 : index
    %c0_7 = arith.constant 0 : index
    %6 = vector.load %arg3[%c0_6, %c0_7] : memref<1x128xf32, #tpu.memory_space<vmem>>, vector<1x128xf32>
    %7 = vector.broadcast %6 : vector<1x128xf32> to vector<128x128xf32>
    %8 = arith.addf %5, %7 : vector<128x128xf32>
    %cst_8 = arith.constant 0.000000e+00 : f32
    %9 = vector.broadcast %cst_8 : f32 to vector<128x128xf32>
    %10 = arith.maximumf %8, %9 : vector<128x128xf32>
    %11 = arith.truncf %10 : vector<128x128xf32> to vector<128x128xbf16>
    %cst_9 = arith.constant dense<0.000000e+00> : vector<128x128xf32>
    %12 = tpu.matmul %0, %11, %cst_9 {dimension_numbers = #tpu.dot_dimension_numbers<[1], [0], [0], [1], [0, 0, 1, 1], [], []>} : vector<128x128xbf16>, vector<128x128xbf16>, vector<128x128xf32> -> vector<128x128xf32>
    %13 = arith.truncf %12 : vector<128x128xf32> to vector<128x128xbf16>
    %c0_10 = arith.constant 0 : index
    %c0_11 = arith.constant 0 : index
    %14 = vector.load %arg4[%c0_10, %c0_11] : memref<128x128xbf16, #tpu.memory_space<vmem>>, vector<128x128xbf16>
    %cst_12 = arith.constant dense<0.000000e+00> : vector<128x128xf32>
    %15 = tpu.matmul %13, %14, %cst_12 {dimension_numbers = #tpu.dot_dimension_numbers<[1], [0], [0], [1], [0, 0, 1, 1], [], []>} : vector<128x128xbf16>, vector<128x128xbf16>, vector<128x128xf32> -> vector<128x128xf32>
    %c0_13 = arith.constant 0 : index
    %c0_14 = arith.constant 0 : index
    %16 = vector.load %arg6[%c0_13, %c0_14] : memref<128x128xbf16, #tpu.memory_space<vmem>>, vector<128x128xbf16>
    %cst_15 = arith.constant dense<0.000000e+00> : vector<128x128xf32>
    %17 = tpu.matmul %13, %16, %cst_15 {dimension_numbers = #tpu.dot_dimension_numbers<[1], [0], [0], [1], [0, 0, 1, 1], [], []>} : vector<128x128xbf16>, vector<128x128xbf16>, vector<128x128xf32> -> vector<128x128xf32>
    %c0_16 = arith.constant 0 : index
    %c0_17 = arith.constant 0 : index
    %18 = vector.load %arg5[%c0_16, %c0_17] : memref<1x128xf32, #tpu.memory_space<vmem>>, vector<1x128xf32>
    %19 = vector.broadcast %18 : vector<1x128xf32> to vector<128x128xf32>
    %20 = arith.addf %15, %19 : vector<128x128xf32>
    %c0_18 = arith.constant 0 : index
    %c0_19 = arith.constant 0 : index
    %21 = vector.load %arg8[%c0_18, %c0_19] : memref<128x128xf32, #tpu.memory_space<vmem>>, vector<128x128xf32>
    tpu.vector_store %arg8[%c0_18, %c0_19], %20 {strides = array<i32>} : memref<128x128xf32, #tpu.memory_space<vmem>>, vector<128x128xf32>,
    %c0_20 = arith.constant 0 : index
    %c0_21 = arith.constant 0 : index
    %22 = vector.load %arg7[%c0_20, %c0_21] : memref<1x128xf32, #tpu.memory_space<vmem>>, vector<1x128xf32>
    %23 = vector.broadcast %22 : vector<1x128xf32> to vector<128x128xf32>
    %24 = arith.addf %17, %23 : vector<128x128xf32>
    %c0_22 = arith.constant 0 : index
    %c0_23 = arith.constant 0 : index
    %25 = vector.load %arg9[%c0_22, %c0_23] : memref<128x128xf32, #tpu.memory_space<vmem>>, vector<128x128xf32>
    tpu.vector_store %arg9[%c0_22, %c0_23], %24 {strides = array<i32>} : memref<128x128xf32, #tpu.memory_space<vmem>>, vector<128x128xf32>,
    return
  }
}

</mosaic_0001>

<bundles_post_ra>
// kernel: fwd.1
= control target key start
LH: loop header
LB: loop body
LE: loop exit
PB: predicated region body
PF: predicated region fallthrough
CT: control target
= control target key end

     0   :  { %s1258_s1 = inlined_call_operand.vmem [shape: bf16[128,128], index: 1, kind: input, shape index: {}]   ;;  %s1259_s2 = inlined_call_operand.vmem [shape: bf16[128,128], index: 2, kind: input, shape index: {}]   ;;  %s1260_s0 = inlined_call_operand.vmem [shape: bf16[128,128], index: 0, kind: input, shape index: {}]   ;;  %s1261_s3 = inlined_call_operand.vmem [shape: f32[1,128], index: 3, kind: input, shape index: {}]   ;;  %s1262_s4 = inlined_call_operand.vmem [shape: bf16[128,128], index: 4, kind: input, shape index: {}]   ;;  %s1263_s6 = inlined_call_operand.vmem [shape: bf16[128,128], index: 6, kind: input, shape index: {}]   ;;  %s1264_s7 = inlined_call_operand.vmem [shape: f32[1,128], index: 7, kind: input, shape index: {}]   ;;  %s1265_s5 = inlined_call_operand.vmem [shape: f32[1,128], index: 5, kind: input, shape index: {}]   ;;  %s1266_s9 = inlined_call_operand.vmem [shape: f32[128,128], index: 9, kind: output, shape index: {1}]   ;;  %s1267_s8 = inlined_call_operand.vmem [shape: f32[128,128], index: 8, kind: output, shape index: {0}]  }
   0x1   :  { %v863_v0 = vld [vmem:[%s1258_s1 + $0x38] sm:$0xff]  ;;  %v862_v1 = vld [vmem:[%s1258_s1 + $0x30] sm:$0xff]  ;;  %v861_v2 = vld [vmem:[%s1258_s1 + $0x28] sm:$0xff] }
   0x2   :  { %159 = vmatpush.bf16.msra.mxu0 %v863_v0  ;;  %888 = vmatpush.bf16.msra.mxu1 %v863_v0  ;;  %v860_v3 = vld [vmem:[%s1258_s1 + $0x20] sm:$0xff]  ;;  %v859_v4 = vld [vmem:[%s1258_s1 + $0x18] sm:$0xff]  ;;  %v858_v5 = vld [vmem:[%s1258_s1 + $0x10] sm:$0xff] }
   0x3   :  { %889 = vmatpush.bf16.msra.mxu2 %v863_v0  ;;  %890 = vmatpush.bf16.msra.mxu3 %v863_v0  ;;  %v857_v6 = vld [vmem:[%s1258_s1 + $0x8] sm:$0xff]  ;;  %v856_v7 = vld [vmem:[%s1258_s1] sm:$0xff]  ;;  %v871_v8 = vld [vmem:[%s1259_s2 + $0x38] sm:$0xff] }
   0x4   :  { %v995_v9 = vld [vmem:[%s1260_s0] sm:$0xff]  ;;  %v1000_v10 = vld [vmem:[%s1260_s0 + $0x10] sm:$0xff]  ;;  %v869_v14 = vld [vmem:[%s1259_s2 + $0x28] sm:$0xff] }
   0x5   :  { %v1005_v11 = vld [vmem:[%s1260_s0 + $0x20] sm:$0xff]  ;;  %v1010_v12 = vld [vmem:[%s1260_s0 + $0x30] sm:$0xff]  ;;  %v867_v16 = vld [vmem:[%s1259_s2 + $0x18] sm:$0xff] }
   0x6   :  { %160 = vmatpush.bf16.msra.mxu0 %v862_v1  ;;  %891 = vmatpush.bf16.msra.mxu1 %v862_v1  ;;  %v870_v13 = vld [vmem:[%s1259_s2 + $0x30] sm:$0xff]  ;;  %v868_v15 = vld [vmem:[%s1259_s2 + $0x20] sm:$0xff]  ;;  %v1031_v17 = vld [vmem:[%s1260_s0 + $0x8] sm:$0xff] }
   0x7   :  { %892 = vmatpush.bf16.msra.mxu2 %v862_v1  ;;  %893 = vmatpush.bf16.msra.mxu3 %v862_v1  ;;  %v1036_v18 = vld [vmem:[%s1260_s0 + $0x18] sm:$0xff]  ;;  %v1041_v19 = vld [vmem:[%s1260_s0 + $0x28] sm:$0xff]  ;;  %v866_v21 = vld [vmem:[%s1259_s2 + $0x10] sm:$0xff] }
   0x8   :  { %v1046_v20 = vld [vmem:[%s1260_s0 + $0x38] sm:$0xff]  ;;  %v865_v22 = vld [vmem:[%s1259_s2 + $0x8] sm:$0xff]  ;;  %v864_v23 = vld [vmem:[%s1259_s2] sm:$0xff] }
   0x9   :  { %v912_v49 = vld [vmem:[%s1261_s3] ss:$0 sm:$0xff] }
   0xa   :  { %161 = vmatpush.bf16.msra.mxu0 %v861_v2  ;;  %894 = vmatpush.bf16.msra.mxu1 %v861_v2 }
   0xb   :  { %895 = vmatpush.bf16.msra.mxu2 %v861_v2  ;;  %896 = vmatpush.bf16.msra.mxu3 %v861_v2 }
   0xe   :  { %162 = vmatpush.bf16.msra.mxu0 %v860_v3  ;;  %897 = vmatpush.bf16.msra.mxu1 %v860_v3 }
   0xf   :  { %898 = vmatpush.bf16.msra.mxu2 %v860_v3  ;;  %899 = vmatpush.bf16.msra.mxu3 %v860_v3 }
  0x12   :  { %163 = vmatpush.bf16.msra.mxu0 %v859_v4  ;;  %900 = vmatpush.bf16.msra.mxu1 %v859_v4 }
  0x13   :  { %901 = vmatpush.bf16.msra.mxu2 %v859_v4  ;;  %902 = vmatpush.bf16.msra.mxu3 %v859_v4 }
  0x16   :  { %164 = vmatpush.bf16.msra.mxu0 %v858_v5  ;;  %903 = vmatpush.bf16.msra.mxu1 %v858_v5 }
  0x17   :  { %904 = vmatpush.bf16.msra.mxu2 %v858_v5  ;;  %905 = vmatpush.bf16.msra.mxu3 %v858_v5 }
  0x1a   :  { %165 = vmatpush.bf16.msra.mxu0 %v857_v6  ;;  %906 = vmatpush.bf16.msra.mxu1 %v857_v6 }
  0x1b   :  { %907 = vmatpush.bf16.msra.mxu2 %v857_v6  ;;  %908 = vmatpush.bf16.msra.mxu3 %v857_v6 }
  0x1e   :  { %166 = vmatpush.bf16.msra.mxu0 %v856_v7  ;;  %909 = vmatpush.bf16.msra.mxu1 %v856_v7 }
  0x1f   :  { %910 = vmatpush.bf16.msra.mxu2 %v856_v7  ;;  %911 = vmatpush.bf16.msra.mxu3 %v856_v7 }
  0x21   :  { %167 = vmatmul.bf16.vlgmr.msra.gmra.mxu0 %v995_v9  ;;  %177 = vmatmul.bf16.vlgmr.msra.gmra.mxu1 %v1000_v10 }
  0x22   :  { %284 = vmatpush.bf16.msrb.mxu1 %v871_v8  ;;  %187 = vmatmul.bf16.vlgmr.msra.gmra.mxu2 %v1005_v11 }
  0x23   :  { %197 = vmatmul.bf16.vlgmr.msra.gmra.mxu3 %v1010_v12 }
  0x26   :  { %285 = vmatpush.bf16.msrb.mxu1 %v870_v13 }
  0x2a   :  { %286 = vmatpush.bf16.msrb.mxu1 %v869_v14 }
  0x2e   :  { %287 = vmatpush.bf16.msrb.mxu1 %v868_v15 }
  0x31   :  { %172 = vmatmul.bf16.gmra.mxu0 %v1031_v17  ;;  %182 = vmatmul.bf16.gmra.mxu1 %v1036_v18 }
  0x32   :  { %288 = vmatpush.bf16.msrb.mxu1 %v867_v16  ;;  %192 = vmatmul.bf16.gmra.mxu2 %v1041_v19 }
  0x33   :  { %202 = vmatmul.bf16.gmra.mxu3 %v1046_v20 }
  0x36   :  { %289 = vmatpush.bf16.msrb.mxu1 %v866_v21 }
  0x3a   :  { %290 = vmatpush.bf16.msrb.mxu1 %v865_v22 }
  0x3e   :  { %291 = vmatpush.bf16.msrb.mxu1 %v864_v23 }
  0x9e   :  { %v168_v24 = vpop.f32.mrf.mxu0  ;;  %v178_v29 = vpop.f32.mrf.mxu1 }
  0xa5   :  { %v188_v35 = vpop.f32.mrf.mxu2 }
  0xa6   :  { %v170_v25 = vpop.f32.mrf.mxu0  ;;  %v180_v31 = vpop.f32.mrf.mxu1 }
  0xa7   :  { %v208_v26 = vpack.c.bf16 %v170_v25, %v168_v24  ;;  %v210_v32 = vpack.c.bf16 %v180_v31, %v178_v29  ;;  %v198_v41 = vpop.f32.mrf.mxu3 }
  0xa9   :  { %292 = vmatmul.bf16.vlgmr.msrb.gmra.mxu1 %v208_v26 }
  0xad   :  { %v190_v37 = vpop.f32.mrf.mxu2 }
  0xae   :  { %v173_v27 = vpop.f32.mrf.mxu0  ;;  %v183_v33 = vpop.f32.mrf.mxu1  ;;  %v212_v38 = vpack.c.bf16 %v190_v37, %v188_v35 }
  0xaf   :  { %v200_v43 = vpop.f32.mrf.mxu3 }
  0xb0   :  { %v214_v44 = vpack.c.bf16 %v200_v43, %v198_v41 }
  0xb5   :  { %v193_v39 = vpop.f32.mrf.mxu2 }
  0xb6   :  { %v175_v28 = vpop.f32.mrf.mxu0  ;;  %v185_v34 = vpop.f32.mrf.mxu1 }
  0xb7   :  { %v209_v30 = vpack.c.bf16 %v175_v28, %v173_v27  ;;  %v211_v36 = vpack.c.bf16 %v185_v34, %v183_v33  ;;  %v203_v45 = vpop.f32.mrf.mxu3 }
  0xb9   :  { %297 = vmatmul.bf16.gmra.mxu1 %v209_v30 }
  0xbd   :  { %v195_v40 = vpop.f32.mrf.mxu2 }
  0xbe   :  { %v213_v42 = vpack.c.bf16 %v195_v40, %v193_v39 }
  0xbf   :  { %v205_v46 = vpop.f32.mrf.mxu3 }
  0xc0   :  { %v215_v47 = vpack.c.bf16 %v205_v46, %v203_v45 }
  0xc9   :  { %302 = vmatmul.bf16.gmra.mxu1 %v210_v32 }
  0xd9   :  { %307 = vmatmul.bf16.gmra.mxu1 %v211_v36 }
  0xe9   :  { %312 = vmatmul.bf16.gmra.mxu1 %v212_v38 }
  0xf9   :  { %317 = vmatmul.bf16.gmra.mxu1 %v213_v42 }
 0x109   :  { %322 = vmatmul.bf16.gmra.mxu1 %v214_v44 }
 0x119   :  { %327 = vmatmul.bf16.gmra.mxu1 %v215_v47 }
 0x126   :  { %v293_v48 = vpop.f32.mrf.mxu1 }
 0x127   :  { %v294_v50 = vadd.f32 %v912_v49, %v293_v48 }
 0x129   :  { %v333_v53 = vmax.f32 %v294_v50, 0.0  ;;  %v887_v50 = vld [vmem:[%s1263_s6 + $0x38] sm:$0xff] }
 0x12a   :  { %615 = vmatpush.bf16.msrb.mxu0 %v887_v50 }
 0x12e   :  { %v295_v51 = vpop.f32.mrf.mxu1 }
 0x12f   :  { %v296_v52 = vadd.f32 %v912_v49, %v295_v51  ;;  %v875_v51 = vld [vmem:[%s1262_s4 + $0x18] sm:$0xff] }
 0x131   :  { %v334_v54 = vmax.f32 %v296_v52, 0.0  ;;  %v883_v52 = vld [vmem:[%s1263_s6 + $0x18] sm:$0xff] }
 0x133   :  { %v349_v55 = vpack.c.bf16 %v334_v54, %v333_v53  ;;  %v874_v53 = vld [vmem:[%s1262_s4 + $0x10] sm:$0xff] }
 0x134   :  { %v882_v54 = vld [vmem:[%s1263_s6 + $0x10] sm:$0xff] }
 0x136   :  { %v298_v56 = vpop.f32.mrf.mxu1 }
 0x137   :  { %v299_v57 = vadd.f32 %v912_v49, %v298_v56  ;;  %v881_v56 = vld [vmem:[%s1263_s6 + $0x8] sm:$0xff] }
 0x139   :  { %v335_v60 = vmax.f32 %v299_v57, 0.0  ;;  %v880_v57 = vld [vmem:[%s1263_s6] sm:$0xff] }
 0x13e   :  { %v300_v58 = vpop.f32.mrf.mxu1 }
 0x13f   :  { %v301_v59 = vadd.f32 %v912_v49, %v300_v58 }
 0x141   :  { %v336_v61 = vmax.f32 %v301_v59, 0.0 }
 0x143   :  { %v350_v62 = vpack.c.bf16 %v336_v61, %v335_v60 }
 0x146   :  { %v303_v63 = vpop.f32.mrf.mxu1 }
 0x147   :  { %v304_v0 = vadd.f32 %v912_v49, %v303_v63 }
 0x149   :  { %v337_v3 = vmax.f32 %v304_v0, 0.0 }
 0x14e   :  { %v305_v1 = vpop.f32.mrf.mxu1 }
 0x14f   :  { %v306_v2 = vadd.f32 %v912_v49, %v305_v1 }
 0x151   :  { %v338_v4 = vmax.f32 %v306_v2, 0.0 }
 0x153   :  { %v351_v5 = vpack.c.bf16 %v338_v4, %v337_v3 }
 0x156   :  { %v308_v6 = vpop.f32.mrf.mxu1 }
 0x157   :  { %v309_v7 = vadd.f32 %v912_v49, %v308_v6 }
 0x159   :  { %v339_v14 = vmax.f32 %v309_v7, 0.0 }
 0x15e   :  { %v310_v8 = vpop.f32.mrf.mxu1 }
 0x15f   :  { %v311_v13 = vadd.f32 %v912_v49, %v310_v8 }
 0x161   :  { %v340_v15 = vmax.f32 %v311_v13, 0.0 }
 0x163   :  { %v352_v16 = vpack.c.bf16 %v340_v15, %v339_v14 }
 0x166   :  { %v313_v21 = vpop.f32.mrf.mxu1 }
 0x167   :  { %v314_v43 = vadd.f32 %v912_v49, %v313_v21 }
 0x169   :  { %v341_v47 = vmax.f32 %v314_v43, 0.0 }
 0x16e   :  { %v315_v22 = vpop.f32.mrf.mxu1 }
 0x16f   :  { %v316_v40 = vadd.f32 %v912_v49, %v315_v22 }
 0x171   :  { %v342_v45 = vmax.f32 %v316_v40, 0.0 }
 0x173   :  { %v353_v48 = vpack.c.bf16 %v342_v45, %v341_v47 }
 0x176   :  { %v318_v23 = vpop.f32.mrf.mxu1 }
 0x177   :  { %v319_v38 = vadd.f32 %v912_v49, %v318_v23 }
 0x179   :  { %v343_v44 = vmax.f32 %v319_v38, 0.0 }
 0x17e   :  { %v320_v24 = vpop.f32.mrf.mxu1 }
 0x17f   :  { %v321_v35 = vadd.f32 %v912_v49, %v320_v24 }
 0x181   :  { %v344_v41 = vmax.f32 %v321_v35, 0.0 }
 0x183   :  { %v354_v46 = vpack.c.bf16 %v344_v41, %v343_v44 }
 0x186   :  { %v323_v25 = vpop.f32.mrf.mxu1 }
 0x187   :  { %v324_v32 = vadd.f32 %v912_v49, %v323_v25  ;;  %v1123_v25 = vld [vmem:[%s1264_s7] ss:$0 sm:$0xff] }
 0x189   :  { %v345_v39 = vmax.f32 %v324_v32, 0.0 }
 0x18e   :  { %v325_v26 = vpop.f32.mrf.mxu1 }
 0x18f   :  { %v326_v30 = vadd.f32 %v912_v49, %v325_v26 }
 0x191   :  { %v346_v36 = vmax.f32 %v326_v30, 0.0 }
 0x193   :  { %v355_v42 = vpack.c.bf16 %v346_v36, %v345_v39 }
 0x196   :  { %v328_v27 = vpop.f32.mrf.mxu1 }
 0x197   :  { %v329_v28 = vadd.f32 %v912_v49, %v328_v27 }
 0x199   :  { %v347_v33 = vmax.f32 %v329_v28, 0.0  ;;  %v1132_v28 = vld [vmem:[%s1265_s5] ss:$0 sm:$0xff] }
 0x19e   :  { %v330_v29 = vpop.f32.mrf.mxu1 }
 0x19f   :  { %v331_v31 = vadd.f32 %v912_v49, %v330_v29  ;;  %v879_v49 = vld [vmem:[%s1262_s4 + $0x38] sm:$0xff] }
 0x1a0   :  { %498 = vmatpush.bf16.msrb.mxu3 %v879_v49 }
 0x1a1   :  { %v348_v34 = vmax.f32 %v331_v31, 0.0 }
 0x1a3   :  { %v356_v37 = vpack.c.bf16 %v348_v34, %v347_v33 }
 0x1a5   :  { %357 = vmatpush.bf16.msrb.mxu2 %v356_v37 }
 0x1a9   :  { %358 = vmatpush.bf16.msrb.mxu2 %v355_v42 }
 0x1ad   :  { %359 = vmatpush.bf16.msrb.mxu2 %v354_v46 }
 0x1b1   :  { %360 = vmatpush.bf16.msrb.mxu2 %v353_v48 }
 0x1b5   :  { %361 = vmatpush.bf16.msrb.mxu2 %v352_v16 }
 0x1b9   :  { %362 = vmatpush.bf16.msrb.mxu2 %v351_v5 }
 0x1bd   :  { %363 = vmatpush.bf16.msrb.mxu2 %v350_v62 }
 0x1c1   :  { %364 = vmatpush.bf16.msrb.mxu2 %v349_v55  ;;  %v873_v55 = vld [vmem:[%s1262_s4 + $0x8] sm:$0xff] }
 0x1c4   :  { %365 = vmatmul.bf16.vlgmr.msrb.gmra.mxu2 %v995_v9  ;;  %v878_v9 = vld [vmem:[%s1262_s4 + $0x30] sm:$0xff] }
 0x1c5   :  { %499 = vmatpush.bf16.msrb.mxu3 %v878_v9 }
 0x1d4   :  { %370 = vmatmul.bf16.gmra.mxu2 %v1031_v17  ;;  %v885_v17 = vld [vmem:[%s1263_s6 + $0x28] sm:$0xff] }
 0x1e4   :  { %375 = vmatmul.bf16.gmra.mxu2 %v1000_v10  ;;  %v886_v10 = vld [vmem:[%s1263_s6 + $0x30] sm:$0xff] }
 0x1e5   :  { %616 = vmatpush.bf16.msrb.mxu0 %v886_v10 }
 0x1e9   :  { %617 = vmatpush.bf16.msrb.mxu0 %v885_v17 }
 0x1f4   :  { %380 = vmatmul.bf16.gmra.mxu2 %v1036_v18  ;;  %v876_v18 = vld [vmem:[%s1262_s4 + $0x20] sm:$0xff] }
 0x204   :  { %385 = vmatmul.bf16.gmra.mxu2 %v1005_v11  ;;  %v877_v11 = vld [vmem:[%s1262_s4 + $0x28] sm:$0xff] }
 0x205   :  { %500 = vmatpush.bf16.msrb.mxu3 %v877_v11 }
 0x209   :  { %501 = vmatpush.bf16.msrb.mxu3 %v876_v18 }
 0x20d   :  { %502 = vmatpush.bf16.msrb.mxu3 %v875_v51 }
 0x211   :  { %503 = vmatpush.bf16.msrb.mxu3 %v874_v53 }
 0x214   :  { %390 = vmatmul.bf16.gmra.mxu2 %v1041_v19  ;;  %v884_v19 = vld [vmem:[%s1263_s6 + $0x20] sm:$0xff] }
 0x215   :  { %618 = vmatpush.bf16.msrb.mxu0 %v884_v19  ;;  %504 = vmatpush.bf16.msrb.mxu3 %v873_v55 }
 0x219   :  { %619 = vmatpush.bf16.msrb.mxu0 %v883_v52 }
 0x21d   :  { %620 = vmatpush.bf16.msrb.mxu0 %v882_v54 }
 0x221   :  { %621 = vmatpush.bf16.msrb.mxu0 %v881_v56 }
 0x224   :  { %395 = vmatmul.bf16.gmra.mxu2 %v1010_v12  ;;  %v872_v12 = vld [vmem:[%s1262_s4] sm:$0xff] }
 0x225   :  { %505 = vmatpush.bf16.msrb.mxu3 %v872_v12  ;;  %622 = vmatpush.bf16.msrb.mxu0 %v880_v57 }
 0x234   :  { %400 = vmatmul.bf16.gmra.mxu2 %v1046_v20 }
 0x247   :  { %v366_v58 = vpop.f32.mrf.mxu2 }
 0x24f   :  { %v368_v59 = vpop.f32.mrf.mxu2 }
 0x250   :  { %v406_v60 = vpack.c.bf16 %v368_v59, %v366_v58 }
 0x252   :  { %506 = vmatmul.bf16.vlgmr.msrb.gmra.mxu3 %v406_v60  ;;  %623 = vmatmul.bf16.vlgmr.msrb.gmra.mxu0 %v406_v60 }
 0x257   :  { %v371_v61 = vpop.f32.mrf.mxu2 }
 0x25f   :  { %v373_v62 = vpop.f32.mrf.mxu2 }
 0x260   :  { %v407_v63 = vpack.c.bf16 %v373_v62, %v371_v61 }
 0x262   :  { %511 = vmatmul.bf16.gmra.mxu3 %v407_v63  ;;  %628 = vmatmul.bf16.gmra.mxu0 %v407_v63 }
 0x267   :  { %v376_v0 = vpop.f32.mrf.mxu2 }
 0x26f   :  { %v378_v1 = vpop.f32.mrf.mxu2 }
 0x270   :  { %v408_v2 = vpack.c.bf16 %v378_v1, %v376_v0 }
 0x272   :  { %516 = vmatmul.bf16.gmra.mxu3 %v408_v2  ;;  %633 = vmatmul.bf16.gmra.mxu0 %v408_v2 }
 0x277   :  { %v381_v3 = vpop.f32.mrf.mxu2 }
 0x27f   :  { %v383_v4 = vpop.f32.mrf.mxu2 }
 0x280   :  { %v409_v5 = vpack.c.bf16 %v383_v4, %v381_v3 }
 0x282   :  { %521 = vmatmul.bf16.gmra.mxu3 %v409_v5  ;;  %638 = vmatmul.bf16.gmra.mxu0 %v409_v5 }
 0x287   :  { %v386_v20 = vpop.f32.mrf.mxu2 }
 0x28f   :  { %v388_v6 = vpop.f32.mrf.mxu2 }
 0x290   :  { %v410_v7 = vpack.c.bf16 %v388_v6, %v386_v20 }
 0x292   :  { %526 = vmatmul.bf16.gmra.mxu3 %v410_v7  ;;  %643 = vmatmul.bf16.gmra.mxu0 %v410_v7 }
 0x297   :  { %v391_v8 = vpop.f32.mrf.mxu2 }
 0x29f   :  { %v393_v13 = vpop.f32.mrf.mxu2 }
 0x2a0   :  { %v411_v14 = vpack.c.bf16 %v393_v13, %v391_v8 }
 0x2a2   :  { %531 = vmatmul.bf16.gmra.mxu3 %v411_v14  ;;  %648 = vmatmul.bf16.gmra.mxu0 %v411_v14 }
 0x2a7   :  { %v396_v15 = vpop.f32.mrf.mxu2 }
 0x2af   :  { %v398_v16 = vpop.f32.mrf.mxu2 }
 0x2b0   :  { %v412_v21 = vpack.c.bf16 %v398_v16, %v396_v15 }
 0x2b2   :  { %536 = vmatmul.bf16.gmra.mxu3 %v412_v21  ;;  %653 = vmatmul.bf16.gmra.mxu0 %v412_v21 }
 0x2b7   :  { %v401_v22 = vpop.f32.mrf.mxu2 }
 0x2bf   :  { %v403_v23 = vpop.f32.mrf.mxu2 }
 0x2c0   :  { %v413_v24 = vpack.c.bf16 %v403_v23, %v401_v22 }
 0x2c2   :  { %541 = vmatmul.bf16.gmra.mxu3 %v413_v24  ;;  %658 = vmatmul.bf16.gmra.mxu0 %v413_v24 }
 0x2cf   :  { %v624_v26 = vpop.f32.mrf.mxu0 }
 0x2d0   :  { %v625_v27 = vadd.f32 %v1123_v25, %v624_v26 }
 0x2d2   :  { %664 = vst [vmem:[%s1266_s9] sm:$0xff] %v625_v27 }
 0x2d5   :  { %v507_v29 = vpop.f32.mrf.mxu3 }
 0x2d6   :  { %v508_v30 = vadd.f32 %v1132_v28, %v507_v29 }
 0x2d7   :  { %v626_v31 = vpop.f32.mrf.mxu0 }
 0x2d8   :  { %547 = vst [vmem:[%s1267_s8] sm:$0xff] %v508_v30  ;;  %v627_v32 = vadd.f32 %v1123_v25, %v626_v31 }
 0x2da   :  { %665 = vst [vmem:[%s1266_s9 + $0x8] sm:$0xff] %v627_v32 }
 0x2dd   :  { %v509_v33 = vpop.f32.mrf.mxu3 }
 0x2de   :  { %v510_v34 = vadd.f32 %v1132_v28, %v509_v33 }
 0x2df   :  { %v629_v35 = vpop.f32.mrf.mxu0 }
 0x2e0   :  { %548 = vst [vmem:[%s1267_s8 + $0x8] sm:$0xff] %v510_v34  ;;  %v630_v36 = vadd.f32 %v1123_v25, %v629_v35 }
 0x2e2   :  { %666 = vst [vmem:[%s1266_s9 + $0x10] sm:$0xff] %v630_v36 }
 0x2e5   :  { %v512_v37 = vpop.f32.mrf.mxu3 }
 0x2e6   :  { %v513_v38 = vadd.f32 %v1132_v28, %v512_v37 }
 0x2e7   :  { %v631_v39 = vpop.f32.mrf.mxu0 }
 0x2e8   :  { %549 = vst [vmem:[%s1267_s8 + $0x10] sm:$0xff] %v513_v38  ;;  %v632_v40 = vadd.f32 %v1123_v25, %v631_v39 }
 0x2ea   :  { %667 = vst [vmem:[%s1266_s9 + $0x18] sm:$0xff] %v632_v40 }
 0x2ed   :  { %v514_v41 = vpop.f32.mrf.mxu3 }
 0x2ee   :  { %v515_v42 = vadd.f32 %v1132_v28, %v514_v41 }
 0x2ef   :  { %v634_v43 = vpop.f32.mrf.mxu0 }
 0x2f0   :  { %550 = vst [vmem:[%s1267_s8 + $0x18] sm:$0xff] %v515_v42  ;;  %v635_v44 = vadd.f32 %v1123_v25, %v634_v43 }
 0x2f2   :  { %668 = vst [vmem:[%s1266_s9 + $0x20] sm:$0xff] %v635_v44 }
 0x2f5   :  { %v517_v45 = vpop.f32.mrf.mxu3 }
 0x2f6   :  { %v518_v46 = vadd.f32 %v1132_v28, %v517_v45 }
 0x2f7   :  { %v636_v47 = vpop.f32.mrf.mxu0 }
 0x2f8   :  { %551 = vst [vmem:[%s1267_s8 + $0x20] sm:$0xff] %v518_v46  ;;  %v637_v48 = vadd.f32 %v1123_v25, %v636_v47 }
 0x2fa   :  { %669 = vst [vmem:[%s1266_s9 + $0x28] sm:$0xff] %v637_v48 }
 0x2fd   :  { %v519_v49 = vpop.f32.mrf.mxu3 }
 0x2fe   :  { %v520_v50 = vadd.f32 %v1132_v28, %v519_v49 }
 0x2ff   :  { %v639_v9 = vpop.f32.mrf.mxu0 }
 0x300   :  { %552 = vst [vmem:[%s1267_s8 + $0x28] sm:$0xff] %v520_v50  ;;  %v640_v10 = vadd.f32 %v1123_v25, %v639_v9 }
 0x302   :  { %670 = vst [vmem:[%s1266_s9 + $0x30] sm:$0xff] %v640_v10 }
 0x305   :  { %v522_v11 = vpop.f32.mrf.mxu3 }
 0x306   :  { %v523_v17 = vadd.f32 %v1132_v28, %v522_v11 }
 0x307   :  { %v641_v18 = vpop.f32.mrf.mxu0 }
 0x308   :  { %553 = vst [vmem:[%s1267_s8 + $0x30] sm:$0xff] %v523_v17  ;;  %v642_v19 = vadd.f32 %v1123_v25, %v641_v18 }
 0x30a   :  { %671 = vst [vmem:[%s1266_s9 + $0x38] sm:$0xff] %v642_v19 }
 0x30d   :  { %v524_v51 = vpop.f32.mrf.mxu3 }
 0x30e   :  { %v525_v52 = vadd.f32 %v1132_v28, %v524_v51 }
 0x30f   :  { %v644_v53 = vpop.f32.mrf.mxu0 }
 0x310   :  { %554 = vst [vmem:[%s1267_s8 + $0x38] sm:$0xff] %v525_v52  ;;  %v645_v54 = vadd.f32 %v1123_v25, %v644_v53 }
 0x312   :  { %672 = vst [vmem:[%s1266_s9 + $0x40] sm:$0xff] %v645_v54 }
 0x315   :  { %v527_v55 = vpop.f32.mrf.mxu3 }
 0x316   :  { %v528_v56 = vadd.f32 %v1132_v28, %v527_v55 }
 0x317   :  { %v646_v12 = vpop.f32.mrf.mxu0 }
 0x318   :  { %555 = vst [vmem:[%s1267_s8 + $0x40] sm:$0xff] %v528_v56  ;;  %v647_v57 = vadd.f32 %v1123_v25, %v646_v12 }
 0x31a   :  { %673 = vst [vmem:[%s1266_s9 + $0x48] sm:$0xff] %v647_v57 }
 0x31d   :  { %v529_v58 = vpop.f32.mrf.mxu3 }
 0x31e   :  { %v530_v59 = vadd.f32 %v1132_v28, %v529_v58 }
 0x31f   :  { %v649_v60 = vpop.f32.mrf.mxu0 }
 0x320   :  { %556 = vst [vmem:[%s1267_s8 + $0x48] sm:$0xff] %v530_v59  ;;  %v650_v61 = vadd.f32 %v1123_v25, %v649_v60 }
 0x322   :  { %674 = vst [vmem:[%s1266_s9 + $0x50] sm:$0xff] %v650_v61 }
 0x325   :  { %v532_v62 = vpop.f32.mrf.mxu3 }
 0x326   :  { %v533_v63 = vadd.f32 %v1132_v28, %v532_v62 }
 0x327   :  { %v651_v0 = vpop.f32.mrf.mxu0 }
 0x328   :  { %557 = vst [vmem:[%s1267_s8 + $0x50] sm:$0xff] %v533_v63  ;;  %v652_v1 = vadd.f32 %v1123_v25, %v651_v0 }
 0x32a   :  { %675 = vst [vmem:[%s1266_s9 + $0x58] sm:$0xff] %v652_v1 }
 0x32d   :  { %v534_v2 = vpop.f32.mrf.mxu3 }
 0x32e   :  { %v535_v3 = vadd.f32 %v1132_v28, %v534_v2 }
 0x32f   :  { %v654_v4 = vpop.f32.mrf.mxu0 }
 0x330   :  { %558 = vst [vmem:[%s1267_s8 + $0x58] sm:$0xff] %v535_v3  ;;  %v655_v5 = vadd.f32 %v1123_v25, %v654_v4 }
 0x332   :  { %676 = vst [vmem:[%s1266_s9 + $0x60] sm:$0xff] %v655_v5 }
 0x335   :  { %v537_v20 = vpop.f32.mrf.mxu3 }
 0x336   :  { %v538_v6 = vadd.f32 %v1132_v28, %v537_v20 }
 0x337   :  { %v656_v7 = vpop.f32.mrf.mxu0 }
 0x338   :  { %559 = vst [vmem:[%s1267_s8 + $0x60] sm:$0xff] %v538_v6  ;;  %v657_v8 = vadd.f32 %v1123_v25, %v656_v7 }
 0x33a   :  { %677 = vst [vmem:[%s1266_s9 + $0x68] sm:$0xff] %v657_v8 }
 0x33d   :  { %v539_v13 = vpop.f32.mrf.mxu3 }
 0x33e   :  { %v540_v14 = vadd.f32 %v1132_v28, %v539_v13 }
 0x33f   :  { %v659_v15 = vpop.f32.mrf.mxu0 }
 0x340   :  { %560 = vst [vmem:[%s1267_s8 + $0x68] sm:$0xff] %v540_v14  ;;  %v660_v16 = vadd.f32 %v1123_v25, %v659_v15 }
 0x342   :  { %678 = vst [vmem:[%s1266_s9 + $0x70] sm:$0xff] %v660_v16 }
 0x345   :  { %v542_v21 = vpop.f32.mrf.mxu3 }
 0x346   :  { %v543_v22 = vadd.f32 %v1132_v28, %v542_v21 }
 0x347   :  { %v661_v23 = vpop.f32.mrf.mxu0 }
 0x348   :  { %561 = vst [vmem:[%s1267_s8 + $0x70] sm:$0xff] %v543_v22  ;;  %v662_v24 = vadd.f32 %v1123_v25, %v661_v23 }
 0x34a   :  { %679 = vst [vmem:[%s1266_s9 + $0x78] sm:$0xff] %v662_v24 }
 0x34d   :  { %v544_v26 = vpop.f32.mrf.mxu3 }
 0x34e   :  { %v545_v27 = vadd.f32 %v1132_v28, %v544_v26 }
 0x350   :  { %562 = vst [vmem:[%s1267_s8 + $0x78] sm:$0xff] %v545_v27 }

</bundles_post_ra>
